<compile_context>
chip_gen: v5e
topology: v5e:2x2
jax: 0.10.0
libtpu: 0.0.40
codegen_flags: <defaults>
</compile_context>

<pallas_src>
import jax
import jax.numpy as jnp
from jax import lax
from jax.experimental import pallas as pl
from jax.experimental.pallas import tpu as pltpu


def _round_up(x, m):
    return ((x + m - 1) // m) * m


def _cdiv(a, b):
    return (a + b - 1) // b


# ----------------------------- Pallas kernel ------------------------------- #

def _make_fused_kernel(GH, H_c, W_c, W_p, C_pad):
    """Fused conv(im2col matmul) + BN shift + ReLU + MaxPool(3x3, s2, p1).

    One grid point = (batch n, pooled-row group g). Produces GH pooled rows.
    """

    def kernel(pa_ref, pb_ref, w_ref, shift_ref, o_ref, conv_ref, row_ref):
        g = pl.program_id(1)
        base = g * (2 * GH)                     # first conv row of this group
        w = w_ref[...]                          # (49, C_pad) bf16, resident
        shift = shift_ref[...]                  # (1, C_pad) f32, resident

        # Conv row directly above this group (the pool's upper neighbour).
        # For g == 0 it is the pool's padding row: post-ReLU values are >= 0,
        # so a 0 row is the identity element for the window max.
        conv_b = jnp.dot(pb_ref[...], w, preferred_element_type=jnp.float32)
        conv_b = jnp.maximum(conv_b + shift, 0.0)
        conv_ref[pl.ds(0, W_c), :] = jnp.where(g > 0, conv_b, 0.0)

        # The 2*GH conv rows of this group as one MXU matmul.
        conv_a = jnp.dot(pa_ref[...], w, preferred_element_type=jnp.float32)
        conv_a = jnp.maximum(conv_a + shift, 0.0)
        # Conv rows past the image (zero im2col rows) would evaluate to
        # relu(shift) != 0; force them to 0 so they cannot win the max.
        flat = lax.broadcasted_iota(jnp.int32, (2 * GH * W_c, 1), 0)
        conv_a = jnp.where(flat < (H_c - base) * W_c, conv_a, 0.0)
        conv_ref[pl.ds(W_c, 2 * GH * W_c), :] = conv_a

        # Pool the GH output rows of this group.
        zero_row = jnp.zeros((1, C_pad), jnp.float32)
        for l in range(GH):
            v0 = conv_ref[pl.ds((2 * l) * W_c, W_c), :]
            v1 = conv_ref[pl.ds((2 * l + 1) * W_c, W_c), :]
            v2 = conv_ref[pl.ds((2 * l + 2) * W_c, W_c), :]
            vmax = jnp.maximum(jnp.maximum(v0, v1), v2)   # vertical 3-tap max
            row_ref[pl.ds(0, 1), :] = zero_row            # left  W-pad (0 ok post-ReLU)
            row_ref[pl.ds(W_c + 1, 1), :] = zero_row      # right W-pad
            row_ref[pl.ds(1, W_c), :] = vmax
            t0 = row_ref[pl.ds(0, W_p, 2), :]
            t1 = row_ref[pl.ds(1, W_p, 2), :]
            t2 = row_ref[pl.ds(2, W_p, 2), :]
            o_ref[l] = jnp.maximum(jnp.maximum(t0, t1), t2)

    return kernel


# ------------------------------ host wrapper ------------------------------- #

def feature_extractor_forward(img, conv_w, bn_gamma, bn_beta, bn_mean, bn_var,
                              eps=1e-5):
    """img: (N, 1, H, W) float32 (NCHW).  Returns (N, 64, H_p, W_p) float32."""
    N, C_in, H, W = img.shape
    C_out, _, KH, KW = conv_w.shape            # (64, 1, 7, 7)
    stride, pad = 2, 2

    H_c = (H + 2 * pad - KH) // stride + 1
    W_c = (W + 2 * pad - KW) // stride + 1
    K = C_in * KH * KW                          # 49 -- deliberately NOT padded
    H_p = (H_c + 2 - 3) // 2 + 1
    W_p = (W_c + 2 - 3) // 2 + 1

    # Pooled rows per grid step: big enough to amortize step overhead, small
    # enough that each batch item still yields >= 2 grid steps (v7x: 2 TCs).
    GH = max(1, min(8, _cdiv(H_p, 2)))
    G = _cdiv(H_p, GH)
    H_cA = 2 * GH * G          # conv rows padded so every group owns 2*GH rows
    H_pA = GH * G

    # ---- im2col (host glue, bf16); K columns ordered (C_in, KH, KW) ----
    # TODO(synk): build these patch rows in-kernel (strip DMA) for large H, W.
    xp = jnp.pad(img.astype(jnp.bfloat16),
                 ((0, 0), (0, 0), (pad, pad), (pad, pad)))
    taps = []
    for kh in range(KH):
        for kw in range(KW):
            taps.append(xp[:, :,
                           kh: kh + stride * (H_c - 1) + 1: stride,
                           kw: kw + stride * (W_c - 1) + 1: stride])
    pats = jnp.stack(taps, axis=0).reshape(KH, KW, N, C_in, H_c, W_c)
    pats = jnp.transpose(pats, (2, 4, 5, 3, 0, 1))       # (N,H_c,W_c,C_in,KH,KW)
    patches = pats.reshape(N, H_c, W_c, K)
    patches = jnp.pad(patches, ((0, 0), (0, H_cA - H_c), (0, 0), (0, 0)))

    pa = patches.reshape(N, G, 2 * GH * W_c, K)          # group-major A blocks
    prev_idx = jnp.array([max(2 * GH * g - 1, 0) for g in range(G)], jnp.int32)
    pb = patches[:, prev_idx]                            # (N, G, W_c, K)

    # ---- fold eval-mode BatchNorm: scale -> weight cols, shift -> epilogue ----
    scale = bn_gamma / jnp.sqrt(bn_var + eps)            # (C_out,)
    shift = bn_beta - bn_mean * scale                    # (C_out,)
    C_pad = _round_up(C_out, 128)
    w_mat = conv_w.reshape(C_out, K).T * scale[None, :]  # (K, C_out), scale folded
    w_p = jnp.zeros((K, C_pad), jnp.bfloat16).at[:, :C_out].set(
        w_mat.astype(jnp.bfloat16))
    shift_p = jnp.zeros((1, C_pad), jnp.float32).at[0, :C_out].set(shift)

    kernel = _make_fused_kernel(GH, H_c, W_c, W_p, C_pad)
    pooled = pl.pallas_call(
        kernel,
        out_shape=jax.ShapeDtypeStruct((N, H_pA, W_p, C_pad), jnp.float32),
        grid=(N, G),
        in_specs=[
            pl.BlockSpec((None, None, 2 * GH * W_c, K),
                         lambda n, g: (n, g, 0, 0)),      # group's patch rows
            pl.BlockSpec((None, None, W_c, K),
                         lambda n, g: (n, g, 0, 0)),      # previous conv row's patches
            pl.BlockSpec((K, C_pad), lambda n, g: (0, 0)),    # resident weights
            pl.BlockSpec((1, C_pad), lambda n, g: (0, 0)),    # resident BN shift
        ],
        out_specs=pl.BlockSpec((None, GH, W_p, C_pad),
                               lambda n, g: (n, g, 0, 0)),
        scratch_shapes=[
            pltpu.VMEM(((2 * GH + 1) * W_c, C_pad), jnp.float32),  # conv rows
            pltpu.VMEM((W_c + 2, C_pad), jnp.float32),             # W-padded row
        ],
        compiler_params=pltpu.CompilerParams(
            dimension_semantics=("parallel", "parallel")),
    )(pa, pb, w_p, shift_p)

    pooled = pooled[:, :H_p, :, :C_out]                # drop row/channel pads
    return jnp.transpose(pooled, (0, 3, 1, 2))         # back to NCHW


# --------------------------- pure-JAX reference ----------------------------- #

def reference_forward(img, conv_w, bn_gamma, bn_beta, bn_mean, bn_var, eps=1e-5):
    """Reference with the same bf16 operand rounding (f32 accumulation) as the kernel."""
    scale = bn_gamma / jnp.sqrt(bn_var + eps)
    shift = bn_beta - bn_mean * scale
    w_folded = (conv_w * scale[:, None, None, None]
                ).astype(jnp.bfloat16).astype(jnp.float32)
    x = img.astype(jnp.bfloat16).astype(jnp.float32)
    conv = lax.conv_general_dilated(
        x, w_folded, window_strides=(2, 2), padding=((2, 2), (2, 2)),
        dimension_numbers=('NCHW', 'OIHW', 'NCHW'),
        precision=lax.Precision.HIGHEST)
    y = jnp.maximum(conv + shift[None, :, None, None], 0.0)
    return lax.reduce_window(
        y, -jnp.inf, lax.max,
        window_dimensions=(1, 1, 3, 3), window_strides=(1, 1, 2, 2),
        padding=((0, 0), (0, 0), (1, 1), (1, 1)))


# --------------------------------- main ------------------------------------- #

if __name__ == "__main__":
    key = jax.random.PRNGKey(0)
    k_img, k_w, k_g, k_b, k_m, k_v = jax.random.split(key, 6)

    N, C_in, H, W = 2, 1, 16, 16
    C_out, KH, KW = 64, 7, 7

    img = jax.random.normal(k_img, (N, C_in, H, W), jnp.float32)
    fan_in = C_in * KH * KW
    conv_w = jax.random.normal(k_w, (C_out, C_in, KH, KW), jnp.float32) * jnp.sqrt(2.0 / fan_in)
    bn_gamma = 0.5 + jax.random.uniform(k_g, (C_out,), jnp.float32)
    bn_beta = 0.1 * jax.random.normal(k_b, (C_out,), jnp.float32)
    bn_mean = 0.1 * jax.random.normal(k_m, (C_out,), jnp.float32)
    bn_var = 0.5 + jax.random.uniform(k_v, (C_out,), jnp.float32)

    fwd = jax.jit(feature_extractor_forward)
    out = jax.block_until_ready(fwd(img, conv_w, bn_gamma, bn_beta, bn_mean, bn_var))

    ref = reference_forward(img, conv_w, bn_gamma, bn_beta, bn_mean, bn_var)
    assert out.shape == (N, C_out, 4, 4), out.shape
    max_err = float(jnp.max(jnp.abs(out - ref)))
    assert jnp.allclose(out, ref, atol=2e-3, rtol=2e-3), max_err

    print("KERNEL_OK")
</pallas_src>

<mosaic_0001>
module attributes {stable_mosaic.version = 11 : i64} {
  func.func @kernel(%arg0: i32, %arg1: i32, %arg2: memref<1x1x28x49xbf16, #tpu.memory_space<vmem>>, %arg3: memref<1x1x7x49xbf16, #tpu.memory_space<vmem>>, %arg4: memref<49x128xbf16, #tpu.memory_space<vmem>>, %arg5: memref<1x128xf32, #tpu.memory_space<vmem>>, %arg6: memref<1x2x4x128xf32, #tpu.memory_space<vmem>>, %arg7: memref<35x128xf32, #tpu.memory_space<vmem>>, %arg8: memref<9x128xf32, #tpu.memory_space<vmem>>) attributes {dimension_semantics = [#tpu.dimension_semantics<parallel>, #tpu.dimension_semantics<parallel>], iteration_bounds = array<i64: 2, 2>, scalar_prefetch = 0 : i64, scratch_operands = 2 : i64, tpu.core_type = #tpu.core_type<tc>, window_params = [{transform_indices = @transform_0, window_bounds = array<i64: 1, 1, 28, 49>}, {transform_indices = @transform_1, window_bounds = array<i64: 1, 1, 7, 49>}, {pipeline_mode = #tpu.pipeline_mode<synchronous>, transform_indices = @transform_2, window_bounds = array<i64: 49, 128>}, {pipeline_mode = #tpu.pipeline_mode<synchronous>, transform_indices = @transform_3, window_bounds = array<i64: 1, 128>}, {transform_indices = @transform_4, window_bounds = array<i64: 1, 2, 4, 128>}]} {
    %c4_i32 = arith.constant 4 : i32
    %0 = arith.muli %arg1, %c4_i32 : i32
    %c0 = arith.constant 0 : index
    %c0_0 = arith.constant 0 : index
    %1 = vector.load %arg4[%c0, %c0_0] : memref<49x128xbf16, #tpu.memory_space<vmem>>, vector<49x128xbf16>
    %c0_1 = arith.constant 0 : index
    %c0_2 = arith.constant 0 : index
    %2 = vector.load %arg5[%c0_1, %c0_2] : memref<1x128xf32, #tpu.memory_space<vmem>>, vector<1x128xf32>
    %c0_3 = arith.constant 0 : index
    %c0_4 = arith.constant 0 : index
    %c0_5 = arith.constant 0 : index
    %c0_6 = arith.constant 0 : index
    %3 = vector.load %arg3[%c0_3, %c0_4, %c0_5, %c0_6] : memref<1x1x7x49xbf16, #tpu.memory_space<vmem>>, vector<1x1x7x49xbf16>
    %4 = vector.shape_cast %3 : vector<1x1x7x49xbf16> to vector<7x49xbf16>
    %cst = arith.constant dense<0.000000e+00> : vector<7x128xf32>
    %5 = tpu.matmul %4, %1, %cst {dimension_numbers = #tpu.dot_dimension_numbers<[1], [0], [0], [1], [0, 0, 1, 1], [], []>} : vector<7x49xbf16>, vector<49x128xbf16>, vector<7x128xf32> -> vector<7x128xf32>
    %6 = vector.broadcast %2 : vector<1x128xf32> to vector<7x128xf32>
    %7 = arith.addf %5, %6 : vector<7x128xf32>
    %cst_7 = arith.constant 0.000000e+00 : f32
    %8 = vector.broadcast %cst_7 : f32 to vector<7x128xf32>
    %9 = arith.maximumf %7, %8 : vector<7x128xf32>
    %c0_i32 = arith.constant 0 : i32
    %10 = arith.cmpi sgt, %arg1, %c0_i32 : i32
    %cst_8 = arith.constant 0.000000e+00 : f32
    %11 = vector.broadcast %cst_8 : f32 to vector<7x128xf32>
    %12 = arith.select %10, %9, %11 : vector<7x128xf32>
    %c0_9 = arith.constant 0 : index
    %c0_10 = arith.constant 0 : index
    %13 = vector.load %arg7[%c0_9, %c0_10] : memref<35x128xf32, #tpu.memory_space<vmem>>, vector<7x128xf32>
    tpu.vector_store %arg7[%c0_9, %c0_10], %12 {strides = array<i32>} : memref<35x128xf32, #tpu.memory_space<vmem>>, vector<7x128xf32>,
    %c0_11 = arith.constant 0 : index
    %c0_12 = arith.constant 0 : index
    %c0_13 = arith.constant 0 : index
    %c0_14 = arith.constant 0 : index
    %14 = vector.load %arg2[%c0_11, %c0_12, %c0_13, %c0_14] : memref<1x1x28x49xbf16, #tpu.memory_space<vmem>>, vector<1x1x28x49xbf16>
    %15 = vector.shape_cast %14 : vector<1x1x28x49xbf16> to vector<28x49xbf16>
    %cst_15 = arith.constant dense<0.000000e+00> : vector<28x128xf32>
    %16 = tpu.matmul %15, %1, %cst_15 {dimension_numbers = #tpu.dot_dimension_numbers<[1], [0], [0], [1], [0, 0, 1, 1], [], []>} : vector<28x49xbf16>, vector<49x128xbf16>, vector<28x128xf32> -> vector<28x128xf32>
    %17 = vector.broadcast %2 : vector<1x128xf32> to vector<28x128xf32>
    %18 = arith.addf %16, %17 : vector<28x128xf32>
    %cst_16 = arith.constant 0.000000e+00 : f32
    %19 = vector.broadcast %cst_16 : f32 to vector<28x128xf32>
    %20 = arith.maximumf %18, %19 : vector<28x128xf32>
    %21 = tpu.iota {dimensions = array<i32: 0>} : vector<28x1xi32>
    %c7_i32 = arith.constant 7 : i32
    %22 = arith.subi %c7_i32, %0 : i32
    %c7_i32_17 = arith.constant 7 : i32
    %23 = arith.muli %22, %c7_i32_17 : i32
    %24 = vector.broadcast %23 : i32 to vector<28x1xi32>
    %25 = arith.cmpi slt, %21, %24 : vector<28x1xi32>
    %cst_18 = arith.constant 0.000000e+00 : f32
    %26 = vector.shape_cast %25 : vector<28x1xi1> to vector<28x1xi1>
    %27 = vector.broadcast %26 : vector<28x1xi1> to vector<28x128xi1>
    %28 = vector.broadcast %cst_18 : f32 to vector<28x128xf32>
    %29 = arith.select %27, %20, %28 : vector<28x128xi1>, vector<28x128xf32>
    %c7 = arith.constant 7 : index
    %c0_19 = arith.constant 0 : index
    %30 = vector.load %arg7[%c7, %c0_19] : memref<35x128xf32, #tpu.memory_space<vmem>>, vector<28x128xf32>
    tpu.vector_store %arg7[%c7, %c0_19], %29 {strides = array<i32>} : memref<35x128xf32, #tpu.memory_space<vmem>>, vector<28x128xf32>,
    %cst_20 = arith.constant 0.000000e+00 : f32
    %31 = vector.broadcast %cst_20 : f32 to vector<1x128xf32>
    %c0_21 = arith.constant 0 : index
    %c0_22 = arith.constant 0 : index
    %32 = vector.load %arg7[%c0_21, %c0_22] : memref<35x128xf32, #tpu.memory_space<vmem>>, vector<7x128xf32>
    %c7_23 = arith.constant 7 : index
    %c0_24 = arith.constant 0 : index
    %33 = vector.load %arg7[%c7_23, %c0_24] : memref<35x128xf32, #tpu.memory_space<vmem>>, vector<7x128xf32>
    %c14 = arith.constant 14 : index
    %c0_25 = arith.constant 0 : index
    %34 = vector.load %arg7[%c14, %c0_25] : memref<35x128xf32, #tpu.memory_space<vmem>>, vector<7x128xf32>
    %35 = arith.maximumf %32, %33 : vector<7x128xf32>
    %36 = arith.maximumf %35, %34 : vector<7x128xf32>
    %c0_26 = arith.constant 0 : index
    %c0_27 = arith.constant 0 : index
    %37 = vector.load %arg8[%c0_26, %c0_27] : memref<9x128xf32, #tpu.memory_space<vmem>>, vector<1x128xf32>
    tpu.vector_store %arg8[%c0_26, %c0_27], %31 {strides = array<i32>} : memref<9x128xf32, #tpu.memory_space<vmem>>, vector<1x128xf32>,
    %c8 = arith.constant 8 : index
    %c0_28 = arith.constant 0 : index
    %38 = vector.load %arg8[%c8, %c0_28] : memref<9x128xf32, #tpu.memory_space<vmem>>, vector<1x128xf32>
    tpu.vector_store %arg8[%c8, %c0_28], %31 {strides = array<i32>} : memref<9x128xf32, #tpu.memory_space<vmem>>, vector<1x128xf32>,
    %c1 = arith.constant 1 : index
    %c0_29 = arith.constant 0 : index
    %39 = vector.load %arg8[%c1, %c0_29] : memref<9x128xf32, #tpu.memory_space<vmem>>, vector<7x128xf32>
    tpu.vector_store %arg8[%c1, %c0_29], %36 {strides = array<i32>} : memref<9x128xf32, #tpu.memory_space<vmem>>, vector<7x128xf32>,
    %c0_30 = arith.constant 0 : index
    %c0_31 = arith.constant 0 : index
    %40 = tpu.strided_load %arg8[%c0_30, %c0_31] {strides = array<i32: 2, 1>} : memref<9x128xf32, #tpu.memory_space<vmem>>, vector<4x128xf32>
    %c1_32 = arith.constant 1 : index
    %c0_33 = arith.constant 0 : index
    %41 = tpu.strided_load %arg8[%c1_32, %c0_33] {strides = array<i32: 2, 1>} : memref<9x128xf32, #tpu.memory_space<vmem>>, vector<4x128xf32>
    %c2 = arith.constant 2 : index
    %c0_34 = arith.constant 0 : index
    %42 = tpu.strided_load %arg8[%c2, %c0_34] {strides = array<i32: 2, 1>} : memref<9x128xf32, #tpu.memory_space<vmem>>, vector<4x128xf32>
    %43 = arith.maximumf %40, %41 : vector<4x128xf32>
    %44 = arith.maximumf %43, %42 : vector<4x128xf32>
    %c0_35 = arith.constant 0 : index
    %c0_36 = arith.constant 0 : index
    %c0_37 = arith.constant 0 : index
    %c0_38 = arith.constant 0 : index
    %45 = vector.load %arg6[%c0_35, %c0_36, %c0_37, %c0_38] : memref<1x2x4x128xf32, #tpu.memory_space<vmem>>, vector<1x1x4x128xf32>
    %46 = vector.shape_cast %45 : vector<1x1x4x128xf32> to vector<4x128xf32>
    %47 = vector.shape_cast %44 : vector<4x128xf32> to vector<1x1x4x128xf32>
    tpu.vector_store %arg6[%c0_35, %c0_36, %c0_37, %c0_38], %47 {strides = array<i32>} : memref<1x2x4x128xf32, #tpu.memory_space<vmem>>, vector<1x1x4x128xf32>,
    %c14_39 = arith.constant 14 : index
    %c0_40 = arith.constant 0 : index
    %48 = vector.load %arg7[%c14_39, %c0_40] : memref<35x128xf32, #tpu.memory_space<vmem>>, vector<7x128xf32>
    %c21 = arith.constant 21 : index
    %c0_41 = arith.constant 0 : index
    %49 = vector.load %arg7[%c21, %c0_41] : memref<35x128xf32, #tpu.memory_space<vmem>>, vector<7x128xf32>
    %c28 = arith.constant 28 : index
    %c0_42 = arith.constant 0 : index
    %50 = vector.load %arg7[%c28, %c0_42] : memref<35x128xf32, #tpu.memory_space<vmem>>, vector<7x128xf32>
    %51 = arith.maximumf %48, %49 : vector<7x128xf32>
    %52 = arith.maximumf %51, %50 : vector<7x128xf32>
    %c0_43 = arith.constant 0 : index
    %c0_44 = arith.constant 0 : index
    %53 = vector.load %arg8[%c0_43, %c0_44] : memref<9x128xf32, #tpu.memory_space<vmem>>, vector<1x128xf32>
    tpu.vector_store %arg8[%c0_43, %c0_44], %31 {strides = array<i32>} : memref<9x128xf32, #tpu.memory_space<vmem>>, vector<1x128xf32>,
    %c8_45 = arith.constant 8 : index
    %c0_46 = arith.constant 0 : index
    %54 = vector.load %arg8[%c8_45, %c0_46] : memref<9x128xf32, #tpu.memory_space<vmem>>, vector<1x128xf32>
    tpu.vector_store %arg8[%c8_45, %c0_46], %31 {strides = array<i32>} : memref<9x128xf32, #tpu.memory_space<vmem>>, vector<1x128xf32>,
    %c1_47 = arith.constant 1 : index
    %c0_48 = arith.constant 0 : index
    %55 = vector.load %arg8[%c1_47, %c0_48] : memref<9x128xf32, #tpu.memory_space<vmem>>, vector<7x128xf32>
    tpu.vector_store %arg8[%c1_47, %c0_48], %52 {strides = array<i32>} : memref<9x128xf32, #tpu.memory_space<vmem>>, vector<7x128xf32>,
    %c0_49 = arith.constant 0 : index
    %c0_50 = arith.constant 0 : index
    %56 = tpu.strided_load %arg8[%c0_49, %c0_50] {strides = array<i32: 2, 1>} : memref<9x128xf32, #tpu.memory_space<vmem>>, vector<4x128xf32>
    %c1_51 = arith.constant 1 : index
    %c0_52 = arith.constant 0 : index
    %57 = tpu.strided_load %arg8[%c1_51, %c0_52] {strides = array<i32: 2, 1>} : memref<9x128xf32, #tpu.memory_space<vmem>>, vector<4x128xf32>
    %c2_53 = arith.constant 2 : index
    %c0_54 = arith.constant 0 : index
    %58 = tpu.strided_load %arg8[%c2_53, %c0_54] {strides = array<i32: 2, 1>} : memref<9x128xf32, #tpu.memory_space<vmem>>, vector<4x128xf32>
    %59 = arith.maximumf %56, %57 : vector<4x128xf32>
    %60 = arith.maximumf %59, %58 : vector<4x128xf32>
    %c0_55 = arith.constant 0 : index
    %c1_56 = arith.constant 1 : index
    %c0_57 = arith.constant 0 : index
    %c0_58 = arith.constant 0 : index
    %61 = vector.load %arg6[%c0_55, %c1_56, %c0_57, %c0_58] : memref<1x2x4x128xf32, #tpu.memory_space<vmem>>, vector<1x1x4x128xf32>
    %62 = vector.shape_cast %61 : vector<1x1x4x128xf32> to vector<4x128xf32>
    %63 = vector.shape_cast %60 : vector<4x128xf32> to vector<1x1x4x128xf32>
    tpu.vector_store %arg6[%c0_55, %c1_56, %c0_57, %c0_58], %63 {strides = array<i32>} : memref<1x2x4x128xf32, #tpu.memory_space<vmem>>, vector<1x1x4x128xf32>,
    return
  }
  func.func @transform_0(%arg0: i32, %arg1: i32) -> (i32, i32, i32, i32) {
    %c0_i32 = arith.constant 0 : i32
    %c0_i32_0 = arith.constant 0 : i32
    %c0_i32_1 = arith.constant 0 : i32
    return %arg0, %arg1, %c0_i32, %c0_i32_0 : i32, i32, i32, i32
  }
  func.func @transform_1(%arg0: i32, %arg1: i32) -> (i32, i32, i32, i32) {
    %c0_i32 = arith.constant 0 : i32
    %c0_i32_0 = arith.constant 0 : i32
    %c0_i32_1 = arith.constant 0 : i32
    return %arg0, %arg1, %c0_i32, %c0_i32_0 : i32, i32, i32, i32
  }
  func.func @transform_2(%arg0: i32, %arg1: i32) -> (i32, i32) {
    %c0_i32 = arith.constant 0 : i32
    %c0_i32_0 = arith.constant 0 : i32
    %c0_i32_1 = arith.constant 0 : i32
    return %c0_i32, %c0_i32_0 : i32, i32
  }
  func.func @transform_3(%arg0: i32, %arg1: i32) -> (i32, i32) {
    %c0_i32 = arith.constant 0 : i32
    %c0_i32_0 = arith.constant 0 : i32
    %c0_i32_1 = arith.constant 0 : i32
    return %c0_i32, %c0_i32_0 : i32, i32
  }
  func.func @transform_4(%arg0: i32, %arg1: i32) -> (i32, i32, i32, i32) {
    %c0_i32 = arith.constant 0 : i32
    %c0_i32_0 = arith.constant 0 : i32
    %c0_i32_1 = arith.constant 0 : i32
    return %arg0, %arg1, %c0_i32, %c0_i32_0 : i32, i32, i32, i32
  }
}

</mosaic_0001>

<bundles_post_ra>
// kernel: feature_extractor_forward.1
= control target key start
LH: loop header
LB: loop body
LE: loop exit
PB: predicated region body
PF: predicated region fallthrough
CT: control target
= control target key end

     0   :  { %s703_s15 = smov 0   ;;  %s705_s16 = smov 0   ;;  %s788_s0 = inlined_call_operand.vmem [shape: bf16[2,2,28,49], index: 0, kind: input, shape index: {}]   ;;  %s789_s1 = inlined_call_operand.vmem [shape: bf16[2,2,7,49], index: 1, kind: input, shape index: {}]   ;;  %s790_s2 = inlined_call_operand.vmem [shape: bf16[49,128], index: 2, kind: input, shape index: {}]   ;;  %s791_s3 = inlined_call_operand.vmem [shape: f32[1,128], index: 3, kind: input, shape index: {}]   ;;  %s792_s4 = inlined_call_operand.vmem [shape: f32[2,4,4,128], index: 4, kind: output, shape index: {}]  }
   0x1   :  { %s707_s17 = smov 0   ;;  %s709_s18 = smov 0  }
   0x2   :  { %s711_s19 = smov 0  }
   0x3 LB: > { %s23_s20 = sadd.s32 1, %s666_s17  ;;  %s26_s21 = sadd.s32 1, %s670_s18  ;;  %s674_s19 = sphi %s711_s19, %s14_s19   ;;  %s670_s18 = sphi %s709_s18, %s796_s18   ;;  %s666_s17 = sphi %s707_s17, %s795_s17   ;;  %s662_s16 = sphi %s705_s16, %s794_s16   ;;  %s658_s15 = sphi %s703_s15, %s793_s15  }
   0x4   : > { %p24_p0 = scmp.ge.s32.totalorder %s23_s20, 2  ;;  %p548_p1 = scmp.ge.s32.totalorder %s674_s19, 1 }
   0x5   : > { %p197_p2 = scmp.lt.s32.totalorder %s674_s19, 5 }
   0x6   : > { %s798_s20 = smov (%p24_p0, %s23_s20), 0  ;;  %s800_s21 = smov (!%p24_p0, %s26_s21), %s670_s18 }
   0x7   : > { %p198_p3 = pnand %p548_p1, %p197_p2  ;;  %p28_p4 = scmp.ge.s32.totalorder %s800_s21, 2 }
   0x8   : > { %p239_p5 = scmp.lt.s32.totalorder (!%p198_p3), %s662_s16, 1  ;;  %p241_p6 = scmp.lt.s32.totalorder (!%p198_p3), %s658_s15, 1 }
   0x9   : > { %s802_s21 = smov (%p28_p4, %s800_s21), 0  ;;  %201 = sbr.rel (%p198_p3) target bundleno = 208 (0xd0), region = 36 }
   0xa   : > { %p325_p7 = scmp.gt.s32.totalorder (!%p198_p3), %s658_s15, 0 }
   0xe   : > { %v274_v0 = vld [vmem:[%s790_s2 + $0x18] sm:$0x1]  ;;  %vm305_vm0 = vcmask 1040384   ;;  %v676_v2 = vmov 0   ;;  %s804_s16 = smov (!%p239_p5, %s662_s16), 1  ;;  %v586_v6 = vld [vmem:[%s790_s2 + $0x10] sm:$0xff]  ;;  %v374_v15 = vlaneseq }
   0xf   : > { %v293_v1 = vunpack.c.l.b16 %v274_v0  ;;  %v307_v3 = vsel %vm305_vm0, 65535, %v676_v2  ;;  %s242_s24 = scalar_select %p241_p6, %s658_s15, 1  ;;  %v585_v7 = vld [vmem:[%s790_s2 + $0x8] sm:$0xff]  ;;  %v584_v8 = vld [vmem:[%s790_s2] sm:$0xff]  ;;  %vm301_vm1 = vcmask 400384   ;;  %v677_v14 = vmov 0.0  }
  0x10   : > { %s550_s25 = sshll.u32 %s804_s16, 3  ;;  %s552_s30 = sshll.u32 %s804_s16, 1  ;;  %407 = vst [vmem:[#allocation3] sm:$0x1] %v677_v14  ;;  %v635_v16 = vld [vmem:[%s791_s3] ss:$0 sm:$0xff] }
  0x11   : > { %v297_v4 = vpack.c.b16 %v293_v1, %v293_v1  ;;  %s549_s26 = sshll.u32 %s242_s24, 2  ;;  %s253_s6 = sadd.s32 %s552_s30, %s242_s24  ;;  %408 = vst [vmem:[#allocation3 + $0x8] sm:$0x1] %v677_v14  ;;  %v375_v17 = vshrl.u32 %v374_v15, 7 }
  0x12   : > { %s245_s29 = sadd.s32 %s550_s25, %s549_s26  ;;  %s553_s12 = sshll.u32 %s253_s6, 2 }
  0x13   : > { %v309_v5 = vand.u32 %v307_v3, %v297_v4  ;;  %s551_s5 = sshll.u32 %s245_s29, 2  ;;  %s255_s24 = scalar_lea.vmem %s789_s1, %s553_s12  ;;  %v377_v28 = vadd.s32 16, %v375_v17  ;;  %v376_v29 = vadd.s32 8, %v375_v17  ;;  %v378_v39 = vadd.s32 24, %v375_v17 }
  0x14   : > { %s247_s11 = scalar_lea.vmem %s788_s0, %s551_s5  ;;  %v276_v12 = vld [vmem:[%s255_s24] sm:$0xf]  ;;  %s557_s25 = sshll.u32 %s658_s15, 2 }
  0x15   : > { %315 = vmatpush.bf16.msra.mxu0 %v309_v5  ;;  %355 = vmatpush.bf16.msra.mxu1 %v309_v5  ;;  %v577_v9 = vld [vmem:[%s247_s11 + $0x8] sm:$0xf]  ;;  %v588_v10 = vld [vmem:[%s247_s11 + $0x8] sm:$0x30]  ;;  %v587_v11 = vld [vmem:[%s247_s11] sm:$0xff]  ;;  %s379_s26 = ssub.s32 7, %s557_s25 }
  0x16   : > { %589 = vmatpush.bf16.msra.mxu2 %v309_v5  ;;  %v578_v13 = vor.u32 %v588_v10, %v577_v9  ;;  %s326_s27 = scalar_select %p325_p7, 1, 0 }
  0x17   : > { %s380_s28 = smul.u32 7, %s379_s26  ;;  %s554_s5 = sshll.u32 %s658_s15, 1 }
  0x18   : > { %v327_v18 = vstv %s326_s27  ;;  %p259_p8 = scmp.lt.s32.totalorder %s554_s5, 3  ;;  %s555_s6 = sshll.u32 %s804_s16, 2 }
  0x19   : > { %316 = vmatpush.bf16.msra.mxu0 %v586_v6  ;;  %356 = vmatpush.bf16.msra.mxu1 %v586_v6  ;;  %v381_v19 = vstv %s380_s28  ;;  %vm328_vm2 = vcmp.eq.s32.totalorder %v327_v18, 1 }
  0x1a   : > { %590 = vmatpush.bf16.msra.mxu2 %v586_v6  ;;  %vm382_vm3 = vcmp.lt.s32.totalorder %v375_v17, %v381_v19  ;;  %vm384_vm4 = vcmp.lt.s32.totalorder %v377_v28, %v381_v19  ;;  %vm383_vm5 = vcmp.lt.s32.totalorder %v376_v29, %v381_v19  ;;  %vm385_vm6 = vcmp.lt.s32.totalorder %v378_v39, %v381_v19  ;;  %s806_s5 = smov (!%p259_p8, %s554_s5), 3 }
  0x1b   : > { %s262_s7 = sadd.s32 %s555_s6, %s806_s5 }
  0x1c   : > { %s556_s8 = sshll.u32 %s262_s7, 2 }
  0x1d   : > { %317 = vmatpush.bf16.msra.mxu0 %v585_v7  ;;  %357 = vmatpush.bf16.msra.mxu1 %v585_v7  ;;  %s264_s10 = scalar_lea.vmem %s792_s4, %s556_s8 }
  0x1e   : > { %591 = vmatpush.bf16.msra.mxu2 %v585_v7 }
  0x21   : > { %318 = vmatpush.bf16.msra.mxu0 %v584_v8  ;;  %358 = vmatpush.bf16.msra.mxu1 %v584_v8 }
  0x22   : > { %592 = vmatpush.bf16.msra.mxu2 %v584_v8 }
  0x24   : > { %570 = vmatmul.msk.bf16.vlgmr.msra.gmra.mxu0 %vm301_vm1, %v276_v12  ;;  %579 = vmatmul.msk.bf16.vlgmr.msra.gmra.mxu1 %vm301_vm1, %v587_v11 }
  0x25   : > { %580 = vmatmul.msk.bf16.vlgmr.msra.gmra.mxu2 %vm301_vm1, %v578_v13 }
  0xa1   : > { %v320_v20 = vpop.f32.mrf.mxu0  ;;  %v360_v21 = vpop.f32.mrf.mxu1 }
  0xa2   : > { %v321_v22 = vadd.f32 %v635_v16, %v320_v20  ;;  %v361_v23 = vadd.f32 %v635_v16, %v360_v21 }
  0xa4   : > { %v324_v24 = vmax.f32 %v321_v22, 0.0  ;;  %v370_v25 = vmax.f32 %v361_v23, 0.0 }
  0xa6   : > { %v329_v26 = vsel %vm328_vm2, %v324_v24, 0.0  ;;  %v394_v27 = vsel %vm382_vm3, %v370_v25, 0.0 }
  0xa7   : > { %330 = vst [vmem:[#allocation2] sm:$0x7f] %v329_v26 }
  0xa8   : > { %398 = vst [vmem:[#allocation2 + $0x7] sm:$0xff] %v394_v27  ;;  %v365_v30 = vpop.f32.mrf.mxu2 }
  0xa9   : > { %v366_v31 = vadd.f32 %v635_v16, %v365_v30  ;;  %v322_v32 = vpop.f32.mrf.mxu0  ;;  %v362_v33 = vpop.f32.mrf.mxu1 }
  0xaa   : > { %v363_v34 = vadd.f32 %v635_v16, %v362_v33 }
  0xab   : > { %v372_v35 = vmax.f32 %v366_v31, 0.0 }
  0xac   : > { %v371_v36 = vmax.f32 %v363_v34, 0.0 }
  0xad   : > { %v396_v37 = vsel %vm384_vm4, %v372_v35, 0.0 }
  0xae   : > { %400 = vst [vmem:[#allocation2 + $0x17] sm:$0xff] %v396_v37  ;;  %v395_v38 = vsel %vm383_vm5, %v371_v36, 0.0  ;;  %v402_v42 = vld [vmem:[#allocation2] sm:$0x7f] }
  0xaf   : > { %399 = vst [vmem:[#allocation2 + $0xf] sm:$0xff] %v395_v38  ;;  %v403_v43 = vld [vmem:[#allocation2 + $0x7] sm:$0x7f] }
  0xb0   : > { %v367_v40 = vpop.f32.mrf.mxu2  ;;  %v405_v45 = vmax.f32 %v402_v42, %v403_v43 }
  0xb1   : > { %v368_v41 = vadd.f32 %v635_v16, %v367_v40 }
  0xb3   : > { %v373_v44 = vmax.f32 %v368_v41, 0.0 }
  0xb5   : > { %v397_v46 = vsel %vm385_vm6, %v373_v44, 0.0 }
  0xb6   : > { %v404_v47 = vld [vmem:[#allocation2 + $0xe] sm:$0x7f]  ;;  %401 = vst [vmem:[#allocation2 + $0x1f] sm:$0xf] %v397_v46  ;;  %v419_v50 = vld [vmem:[#allocation2 + $0x15] sm:$0x7f] }
  0xb7   : > { %v406_v48 = vmax.f32 %v405_v45, %v404_v47  ;;  %v418_v49 = vld [vmem:[#allocation2 + $0xe] sm:$0x7f] }
  0xb8   : > { %v421_v52 = vmax.f32 %v418_v49, %v419_v50 }
  0xb9   : > { %409 = vst [vmem:[#allocation3 + $0x1] sm:$0x7f] %v406_v48 }
  0xbd   : > { %v420_v51 = vld [vmem:[#allocation2 + $0x1c] sm:$0x7f] }
  0xbe   : > { %v422_v57 = vmax.f32 %v421_v52, %v420_v51 }
  0xc0   : > { %v410_v53 = vld [vmem:[#allocation3] ss:$2 sm:$0xf]  ;;  %v412_v54 = vld [vmem:[#allocation3 + $0x1] ss:$2 sm:$0xf] }
  0xc1   : > { %v414_v55 = vld [vmem:[#allocation3 + $0x2] ss:$2 sm:$0xf]  ;;  %v415_v56 = vmax.f32 %v410_v53, %v412_v54  ;;  %423 = vst [vmem:[#allocation3] sm:$0x1] %v677_v14 }
  0xc2   : > { %424 = vst [vmem:[#allocation3 + $0x8] sm:$0x1] %v677_v14 }
  0xc3   : > { %v416_v58 = vmax.f32 %v415_v56, %v414_v55  ;;  %425 = vst [vmem:[#allocation3 + $0x1] sm:$0x7f] %v422_v57 }
  0xc5   : > { %417 = vst [vmem:[%s264_s10] sm:$0xf] %v416_v58 }
  0xca   : > { %v426_v59 = vld [vmem:[#allocation3] ss:$2 sm:$0xf]  ;;  %v427_v60 = vld [vmem:[#allocation3 + $0x1] ss:$2 sm:$0xf] }
  0xcb   : > { %v429_v61 = vmax.f32 %v426_v59, %v427_v60  ;;  %v428_v62 = vld [vmem:[#allocation3 + $0x2] ss:$2 sm:$0xf] }
  0xcd   : > { %v430_v63 = vmax.f32 %v429_v61, %v428_v62 }
  0xcf   : > { %581 = vst [vmem:[%s264_s10 + $0x4] sm:$0xf] %v430_v63 }
  0xd0 PF: > { %s14_s19 = sadd.s32 1, %s674_s19   ;;  %s793_s15 = smov %s666_s17 }
  0xd1   : > { %p11_p9 = scmp.ge.s32.totalorder %s14_s19, 6   ;;  %s794_s16 = smov %s670_s18 }
  0xd2   : > { %s795_s17 = smov %s798_s20  ;;  %s796_s18 = smov %s802_s21 }
  0xd3   :  { %13 = sbr.rel (!%p11_p9) target bundleno = 3 (0x3), region = 72 }

</bundles_post_ra>
